<compile_context>
chip_gen: v6e
topology: v6e:2x2x1
jax: 0.10.0
libtpu: 0.0.40
codegen_flags: <defaults>
</compile_context>

<pallas_src>
import functools

import jax
import jax.numpy as jnp
from jax.experimental import pallas as pl
from jax.experimental.pallas import tpu as pltpu


def _round_up(x, m):
    return (x + m - 1) // m * m


def _choose_tile(batch, tb_req):
    """Pick a batch tile (multiple of 128) and padded batch.

    Prefers the largest tile <= tb_req, but shrinks it so the grid has at
    least 2 steps whenever there is more than one 128-lane chunk of work
    (lets the "parallel" grid axis split across v7x's two TensorCores).
    """
    n128 = _round_up(batch, 128) // 128            # work, in 128-lane chunks
    tbc = max(1, min(tb_req // 128, n128))         # requested tile, in chunks
    while n128 > 1 and -(-n128 // tbc) < 2:        # ensure >= 2 grid steps
        tbc = max(1, tbc // 2)
    tb = tbc * 128
    b_pad = _round_up(batch, tb)
    return tb, b_pad


def _deepcrossing_kernel(xt_ref, w2_ref, b2_ref, wf_ref, bf_ref, o_ref, *, num_res):
    """One batch tile, batch-on-lanes layout.

    xt_ref: (D, TB)           bf16 transposed features (this batch tile)
    w2_ref: (num_res, D, D)   f32 folded fc2 weights (I + W2), applied as W' @ x_t
    b2_ref: (num_res, D, 1)   f32 fc2 biases
    wf_ref: (D, 1)            f32 final fc weight (column)
    bf_ref: (1, 1)            f32 final fc bias
    o_ref : (1, TB)           f32 sigmoid output (lane-dense stores)
    """
    x = xt_ref[...].astype(jnp.float32)            # (D, TB) f32 activations

    # ResidualUnit: x = fc2(x) + x, with the residual folded into the weight:
    # x <- (I + W2) @ x + b2.  fc1 + relu is dead code in the reference.
    for r in range(num_res):                       # static unroll; num_res small
        x = jnp.dot(w2_ref[r], x, preferred_element_type=jnp.float32) + b2_ref[r]

    # Final Linear(D, 1): VPU multiply + sublane (XLU) reduce; avoids a
    # 1-column MXU matmul.
    logits = jnp.sum(x * wf_ref[...], axis=0, keepdims=True) + bf_ref[...]   # (1, TB)
    o_ref[...] = jax.nn.sigmoid(logits).astype(o_ref.dtype)


def deepcrossing_forward(x_idx, params, *, tb=4096):
    """x_idx: (B, num_fields) int32 categorical indices -> (B, 1) probabilities."""
    # Glue: FeaturesEmbedding gather + flatten + transpose, in plain JAX.
    # Cast to bf16 BEFORE the minor-axis transpose so that, if XLA has to
    # materialize the transposed slab, it moves bf16 rather than f32.
    offsets = params["offsets"]                                    # (num_fields,)
    table = params["embedding"]                                    # (sum(field_dims), E)
    emb = jnp.take(table, x_idx + offsets[None, :], axis=0)        # (B, F, E)
    B = emb.shape[0]
    feats_t = emb.astype(jnp.bfloat16).reshape(B, -1).T            # (D, B), batch -> lanes

    D = feats_t.shape[0]
    num_res = params["w2"].shape[0]

    tb, b_pad = _choose_tile(B, tb)
    if b_pad != B:
        # Padded batch lanes flow through the affine stack + sigmoid (all
        # finite values, never NaN/Inf) and are sliced off below.
        feats_t = jnp.pad(feats_t, ((0, 0), (0, b_pad - B)))
    grid = (b_pad // tb,)

    # Fold the residual connection into the weight: applied as (I + W2) @ x_t,
    # which equals x @ (W2 + I)^T = x @ W2^T + x in row layout.
    w2_res = params["w2"] + jnp.eye(D, dtype=params["w2"].dtype)[None]

    kernel = functools.partial(_deepcrossing_kernel, num_res=num_res)
    out = pl.pallas_call(
        kernel,
        out_shape=jax.ShapeDtypeStruct((1, b_pad), jnp.float32),
        grid=grid,
        in_specs=[
            pl.BlockSpec((D, tb), lambda i: (0, i)),               # streamed, double-buffered
            pl.BlockSpec((num_res, D, D), lambda i: (0, 0, 0)),    # tiny weights stay resident
            pl.BlockSpec((num_res, D, 1), lambda i: (0, 0, 0)),
            pl.BlockSpec((D, 1), lambda i: (0, 0)),
            pl.BlockSpec((1, 1), lambda i: (0, 0)),
        ],
        out_specs=pl.BlockSpec((1, tb), lambda i: (0, i)),         # lane-dense output stores
        compiler_params=pltpu.CompilerParams(
            dimension_semantics=("parallel",),                     # megacore sharding on v7x
            vmem_limit_bytes=32 * 1024 * 1024,                     # v5e default is only 16 MiB
        ),
    )(feats_t, w2_res, params["b2"], params["wf"], params["bf"])

    return out[0, :B].reshape(B, 1)


def init_params(key, field_dims, embed_dim=4, num_res=1):
    num_fields = len(field_dims)
    input_size = num_fields * embed_dim
    total_embeddings = int(sum(field_dims))
    k_emb, k_w2, k_b2, k_wf, k_bf = jax.random.split(key, 5)

    offsets = jnp.asarray(
        [0] + list(jnp.cumsum(jnp.asarray(field_dims[:-1], jnp.int32))), jnp.int32
    )
    return {
        "offsets": offsets,
        "embedding": jax.random.normal(k_emb, (total_embeddings, embed_dim), jnp.float32) * 0.1,
        # fc2 of each ResidualUnit, stored so the kernel applies y_t = W @ x_t.
        "w2": jax.random.normal(k_w2, (num_res, input_size, input_size), jnp.float32) * 0.1,
        "b2": jax.random.normal(k_b2, (num_res, input_size, 1), jnp.float32) * 0.1,
        # final Linear(input_size, 1): column weight + scalar bias.
        "wf": jax.random.normal(k_wf, (input_size, 1), jnp.float32) * 0.1,
        "bf": jax.random.normal(k_bf, (1, 1), jnp.float32) * 0.1,
    }


def reference_forward(x_idx, params):
    """Pure-JAX f32 reference mirroring the PyTorch forward (row layout)."""
    emb = jnp.take(params["embedding"], x_idx + params["offsets"][None, :], axis=0)
    x = emb.reshape(emb.shape[0], -1)                              # (B, D)
    for r in range(params["w2"].shape[0]):
        x = x @ params["w2"][r].T + params["b2"][r][:, 0][None, :] + x
    logits = x @ params["wf"] + params["bf"][0, 0]
    return jax.nn.sigmoid(logits)                                   # (B, 1)


if __name__ == "__main__":
    key = jax.random.PRNGKey(0)
    field_dims = (3, 4, 5, 6)      # 4 fields
    embed_dim = 4                  # input_size D = 16
    num_res = 2
    batch = 500                    # -> tile 256, 2 parallel grid steps

    k_params, k_x = jax.random.split(key)
    params = init_params(k_params, field_dims, embed_dim, num_res)

    # deterministic categorical inputs, one column per field, valid indices
    cols = []
    for f, fd in enumerate(field_dims):
        kf = jax.random.fold_in(k_x, f)
        cols.append(jax.random.randint(kf, (batch,), 0, fd, dtype=jnp.int32))
    x_idx = jnp.stack(cols, axis=1)  # (batch, num_fields)

    fwd = jax.jit(functools.partial(deepcrossing_forward, tb=4096))
    out = jax.block_until_ready(fwd(x_idx, params))

    ref = reference_forward(x_idx, params)
    assert out.shape == (batch, 1), out.shape
    # Only the feature stream is bf16 (weights/accumulation are f32).
    assert jnp.allclose(out, ref, atol=5e-3, rtol=5e-3), float(jnp.max(jnp.abs(out - ref)))

    print("KERNEL_OK")
</pallas_src>

<mosaic_0001>
module attributes {stable_mosaic.version = 11 : i64} {
  func.func @_deepcrossing_kernel(%arg0: i32, %arg1: memref<16x256xbf16, #tpu.memory_space<vmem>>, %arg2: memref<2x16x16xf32, #tpu.memory_space<vmem>>, %arg3: memref<2x16x1xf32, #tpu.memory_space<vmem>>, %arg4: memref<16x1xf32, #tpu.memory_space<vmem>>, %arg5: memref<1x1xf32, #tpu.memory_space<vmem>>, %arg6: memref<1x256xf32, #tpu.memory_space<vmem>>) attributes {dimension_semantics = [#tpu.dimension_semantics<parallel>], iteration_bounds = array<i64: 2>, scalar_prefetch = 0 : i64, scratch_operands = 0 : i64, tpu.core_type = #tpu.core_type<tc>, window_params = [{transform_indices = @transform_0, window_bounds = array<i64: 16, 256>}, {pipeline_mode = #tpu.pipeline_mode<synchronous>, transform_indices = @transform_1, window_bounds = array<i64: 2, 16, 16>}, {pipeline_mode = #tpu.pipeline_mode<synchronous>, transform_indices = @transform_2, window_bounds = array<i64: 2, 16, 1>}, {pipeline_mode = #tpu.pipeline_mode<synchronous>, transform_indices = @transform_3, window_bounds = array<i64: 16, 1>}, {pipeline_mode = #tpu.pipeline_mode<synchronous>, transform_indices = @transform_4, window_bounds = array<i64: 1, 1>}, {transform_indices = @transform_5, window_bounds = array<i64: 1, 256>}]} {
    %c0 = arith.constant 0 : index
    %c0_0 = arith.constant 0 : index
    %0 = vector.load %arg1[%c0, %c0_0] : memref<16x256xbf16, #tpu.memory_space<vmem>>, vector<16x256xbf16>
    %1 = arith.extf %0 : vector<16x256xbf16> to vector<16x256xf32>
    %c0_1 = arith.constant 0 : index
    %c0_2 = arith.constant 0 : index
    %c0_3 = arith.constant 0 : index
    %2 = vector.load %arg2[%c0_1, %c0_2, %c0_3] : memref<2x16x16xf32, #tpu.memory_space<vmem>>, vector<1x16x16xf32>
    %3 = vector.shape_cast %2 : vector<1x16x16xf32> to vector<16x16xf32>
    %cst = arith.constant dense<0.000000e+00> : vector<16x256xf32>
    %4 = tpu.matmul %3, %1, %cst {dimension_numbers = #tpu.dot_dimension_numbers<[1], [0], [0], [1], [0, 0, 1, 1], [], []>} : vector<16x16xf32>, vector<16x256xf32>, vector<16x256xf32> -> vector<16x256xf32>
    %c0_4 = arith.constant 0 : index
    %c0_5 = arith.constant 0 : index
    %c0_6 = arith.constant 0 : index
    %5 = vector.load %arg3[%c0_4, %c0_5, %c0_6] : memref<2x16x1xf32, #tpu.memory_space<vmem>>, vector<1x16x1xf32>
    %6 = vector.shape_cast %5 : vector<1x16x1xf32> to vector<16x1xf32>
    %7 = vector.broadcast %6 : vector<16x1xf32> to vector<16x256xf32>
    %8 = arith.addf %4, %7 : vector<16x256xf32>
    %c1 = arith.constant 1 : index
    %c0_7 = arith.constant 0 : index
    %c0_8 = arith.constant 0 : index
    %9 = vector.load %arg2[%c1, %c0_7, %c0_8] : memref<2x16x16xf32, #tpu.memory_space<vmem>>, vector<1x16x16xf32>
    %10 = vector.shape_cast %9 : vector<1x16x16xf32> to vector<16x16xf32>
    %cst_9 = arith.constant dense<0.000000e+00> : vector<16x256xf32>
    %11 = tpu.matmul %10, %8, %cst_9 {dimension_numbers = #tpu.dot_dimension_numbers<[1], [0], [0], [1], [0, 0, 1, 1], [], []>} : vector<16x16xf32>, vector<16x256xf32>, vector<16x256xf32> -> vector<16x256xf32>
    %c1_10 = arith.constant 1 : index
    %c0_11 = arith.constant 0 : index
    %c0_12 = arith.constant 0 : index
    %12 = vector.load %arg3[%c1_10, %c0_11, %c0_12] : memref<2x16x1xf32, #tpu.memory_space<vmem>>, vector<1x16x1xf32>
    %13 = vector.shape_cast %12 : vector<1x16x1xf32> to vector<16x1xf32>
    %14 = vector.broadcast %13 : vector<16x1xf32> to vector<16x256xf32>
    %15 = arith.addf %11, %14 : vector<16x256xf32>
    %c0_13 = arith.constant 0 : index
    %c0_14 = arith.constant 0 : index
    %16 = vector.load %arg4[%c0_13, %c0_14] : memref<16x1xf32, #tpu.memory_space<vmem>>, vector<16x1xf32>
    %17 = vector.broadcast %16 : vector<16x1xf32> to vector<16x256xf32>
    %18 = arith.mulf %15, %17 : vector<16x256xf32>
    %cst_15 = arith.constant dense<0.000000e+00> : vector<256xf32>
    %19 = vector.multi_reduction <add>, %18, %cst_15 [0] : vector<16x256xf32> to vector<256xf32>
    %20 = vector.shape_cast %19 : vector<256xf32> to vector<1x256xf32>
    %c0_16 = arith.constant 0 : index
    %c0_17 = arith.constant 0 : index
    %21 = vector.load %arg5[%c0_16, %c0_17] : memref<1x1xf32, #tpu.memory_space<vmem>>, vector<1x1xf32>
    %22 = vector.broadcast %21 : vector<1x1xf32> to vector<1x256xf32>
    %23 = arith.addf %20, %22 : vector<1x256xf32>
    %24 = arith.negf %23 : vector<1x256xf32>
    %25 = math.exp %24 : vector<1x256xf32>
    %cst_18 = arith.constant 1.000000e+00 : f32
    %26 = vector.broadcast %cst_18 : f32 to vector<1x256xf32>
    %27 = arith.addf %26, %25 : vector<1x256xf32>
    %28 = arith.divf %26, %27 : vector<1x256xf32>
    %c0_19 = arith.constant 0 : index
    %c0_20 = arith.constant 0 : index
    %29 = vector.load %arg6[%c0_19, %c0_20] : memref<1x256xf32, #tpu.memory_space<vmem>>, vector<1x256xf32>
    tpu.vector_store %arg6[%c0_19, %c0_20], %28 {strides = array<i32>} : memref<1x256xf32, #tpu.memory_space<vmem>>, vector<1x256xf32>,
    return
  }
  func.func @transform_0(%arg0: i32) -> (i32, i32) {
    %c0_i32 = arith.constant 0 : i32
    %c0_i32_0 = arith.constant 0 : i32
    return %c0_i32, %arg0 : i32, i32
  }
  func.func @transform_1(%arg0: i32) -> (i32, i32, i32) {
    %c0_i32 = arith.constant 0 : i32
    %c0_i32_0 = arith.constant 0 : i32
    %c0_i32_1 = arith.constant 0 : i32
    %c0_i32_2 = arith.constant 0 : i32
    return %c0_i32, %c0_i32_0, %c0_i32_1 : i32, i32, i32
  }
  func.func @transform_2(%arg0: i32) -> (i32, i32, i32) {
    %c0_i32 = arith.constant 0 : i32
    %c0_i32_0 = arith.constant 0 : i32
    %c0_i32_1 = arith.constant 0 : i32
    %c0_i32_2 = arith.constant 0 : i32
    return %c0_i32, %c0_i32_0, %c0_i32_1 : i32, i32, i32
  }
  func.func @transform_3(%arg0: i32) -> (i32, i32) {
    %c0_i32 = arith.constant 0 : i32
    %c0_i32_0 = arith.constant 0 : i32
    %c0_i32_1 = arith.constant 0 : i32
    return %c0_i32, %c0_i32_0 : i32, i32
  }
  func.func @transform_4(%arg0: i32) -> (i32, i32) {
    %c0_i32 = arith.constant 0 : i32
    %c0_i32_0 = arith.constant 0 : i32
    %c0_i32_1 = arith.constant 0 : i32
    return %c0_i32, %c0_i32_0 : i32, i32
  }
  func.func @transform_5(%arg0: i32) -> (i32, i32) {
    %c0_i32 = arith.constant 0 : i32
    %c0_i32_0 = arith.constant 0 : i32
    return %c0_i32, %arg0 : i32, i32
  }
}

</mosaic_0001>

<bundles_post_ra>
// kernel: deepcrossing_forward.1
= control target key start
LH: loop header
LB: loop body
LE: loop exit
PB: predicated region body
PF: predicated region fallthrough
CT: control target
= control target key end

     0   :  { %s809_s0 = inlined_call_operand.vmem [shape: bf16[16,512], index: 0, kind: input, shape index: {}]   ;;  %s810_s1 = inlined_call_operand.vmem [shape: f32[2,16,16], index: 1, kind: input, shape index: {}]   ;;  %s811_s2 = inlined_call_operand.vmem [shape: f32[2,16,1], index: 2, kind: input, shape index: {}]   ;;  %s812_s3 = inlined_call_operand.vmem [shape: f32[16,1], index: 3, kind: input, shape index: {}]   ;;  %s813_s4 = inlined_call_operand.<no memory space> [shape: f32[1,1], index: 4, kind: input, shape index: {}]   ;;  %s814_s5 = inlined_call_operand.vmem [shape: f32[1,512], index: 5, kind: output, shape index: {}]  }
   0x1   :  { %v10_v0 = vstv %s813_s4 }
   0x2   :  { %11 = vst [vmem:[#allocation2] sm:$0x1] %v10_v0 }
   0x3   :  { %s723_s20 = smov 0   ;;  %s725_s21 = smov 0  }
   0x4   :  { %s727_s22 = smov 0  }
   0x5 LB: > { %s603_s4 = sadd.s32 4294967295, %s685_s22   ;;  %s740_s23 = sadd.s32 1, %s685_s22   ;;  %s685_s22 = sphi %s727_s22, %s817_s22   ;;  %s681_s21 = sphi %s725_s21, %s816_s21   ;;  %s677_s20 = sphi %s723_s20, %s815_s20  }
   0x6   : > { %s21_s24 = ssub.s32 %s685_s22, %s740_s23  ;;  %s24_s25 = sadd.s32 1, %s681_s21 }
   0x7   : > { %p22_p0 = scmp.eq.s32.totalorder %s21_s24, 0  ;;  %p31_p1 = scmp.ne.s32.totalorder %s681_s21, %s677_s20 }
   0x8   : > { %p32_p2 = scmp.eq.s32.totalorder %s685_s22, 0  ;;  %p606_p4 = scmp.ge.s32.totalorder %s685_s22, 2 }
   0x9   : > { %s749_s26 = scalar_select %p22_p0, %s681_s21, %s24_s25  }
   0xa   : > { %p33_p3 = por %p32_p2, %p31_p1  ;;  %179 = sbr.rel (%p606_p4) target bundleno = 20 (0x14), region = 32 }
   0xf   : > { %182 = sbr.rel (!%p33_p3) target bundleno = 20 (0x14), region = 36  ;;  %s184_s27 = sand.u32 (%p33_p3), 1, %s681_s21  }
  0x10   : > { %s625_s28 = sshll.u32 (%p33_p3), %s685_s22, 3  ;;  %s607_s29 = sshll.u32 (%p33_p3), %s184_s27, 4 }
  0x11   : > { %s189_s7 = scalar_lea.vmem (%p33_p3), %s809_s0, %s625_s28  ;;  %s186_s8 = scalar_lea.vmem (%p33_p3), [#allocation3], %s607_s29 }
  0x12   : > { %v220_v1 = vld [vmem:[%s189_s7] sm:$0xff] (%p33_p3)  ;;  %v222_v2 = vld [vmem:[%s189_s7 + $0x10] sm:$0xff] (%p33_p3) }
  0x13   : > { %221 = vst [vmem:[%s186_s8] sm:$0xff] (%p33_p3), %v220_v1  ;;  %223 = vst [vmem:[%s186_s8 + $0x8] sm:$0xff] (%p33_p3), %v222_v2 }
  0x14 PF: > { %p610_p5 = scmp.ge.s32.totalorder %s685_s22, 1  ;;  %p228_p6 = scmp.lt.s32.totalorder %s685_s22, 3 }
  0x16   : > { %p229_p7 = pnand %p610_p5, %p228_p6 }
  0x17   : > { %s235_s9 = sand.u32 (!%p229_p7), 1, %s677_s20   ;;  %s612_s11 = sshll.u32 (!%p229_p7), %s603_s4, 1 }
  0x18   : > { %232 = sbr.rel (%p229_p7) target bundleno = 500 (0x1f4), region = 74  ;;  %s611_s10 = sshll.u32 (!%p229_p7), %s235_s9, 4 }
  0x19   : > { %s237_s13 = scalar_lea.vmem (!%p229_p7), [#allocation3], %s611_s10  ;;  %p263_p8 = scmp.lt.s32.totalorder (!%p229_p7), %s612_s11, 3 }
  0x1d   : > { %v687_v3 = vmov 0.0   ;;  %v688_v4 = vmov 0   ;;  %v276_v5 = vld [vmem:[%s811_s2 + $0x8] sm:$0xff]  ;;  %v275_v8 = vld [vmem:[%s811_s2] sm:$0xff]  ;;  %vm287_vm0 = vcmask 130048   ;;  %v617_v17 = vld [vmem:[%s811_s2 + $0x10] sm:$0xff]  ;;  %v506_v46 = vlaneseq }
  0x1e   : > { %358 = vmatprep.mubr.f32.mxu0 %v687_v3  ;;  %653 = vset.pattern.permute.xlu0 %v688_v4  ;;  %v267_v6 = vld [vmem:[%s237_s13] sm:$0xff]  ;;  %v268_v7 = vld [vmem:[%s237_s13 + $0x8] sm:$0xff]  ;;  %s819_s11 = smov (!%p263_p8, %s612_s11), 3 }
  0x1f   : > { %284 = vperm.xlu0 %653, %v276_v5   ;;  %457 = vmatprep.mubr.f32.mxu1 %v687_v3  ;;  %v272_v9 = vunpack.c.h.bf16 %v268_v7  ;;  %v271_v10 = vunpack.c.l.bf16 %v268_v7  ;;  %v270_v11 = vunpack.c.h.bf16 %v267_v6  ;;  %v269_v12 = vunpack.c.l.bf16 %v267_v6  ;;  %v273_v13 = vld [vmem:[%s810_s1] sm:$0xff]  ;;  %v274_v15 = vld [vmem:[%s810_s1 + $0x8] sm:$0xff]  ;;  %v618_v18 = vld [vmem:[%s811_s2 + $0x18] sm:$0xff]  ;;  %s265_s14 = scalar_lea.vmem %s814_s5, %s819_s11 }
  0x20   : > { %654 = vset.pattern.permute.xlu1 %v688_v4  ;;  %v470_v14 = vld [vmem:[%s812_s3] sm:$0xff]  ;;  %v471_v19 = vld [vmem:[%s812_s3 + $0x8] sm:$0xff]  ;;  %v615_v30 = vld [vmem:[%s810_s1 + $0x10] sm:$0xff]  ;;  %v507_v52 = vshrl.u32 %v506_v46, 7  ;;  %vm544_vm1 = vcmp.lt.s32.totalorder %v506_v46, 256 }
  0x21   : > { %322 = vmatprep.subr.mxu0 %v272_v9  ;;  %v500_v16 = vld [vmem:[#allocation2] sm:$0x1]  ;;  %379 = vperm.xlu1 %654, %v617_v17   ;;  %v616_v31 = vld [vmem:[%s810_s1 + $0x18] sm:$0xff] }
  0x22   : > { %323 = vmatpush1.msra.mxu0 %v271_v10  ;;  %v508_v57 = vsub.s32 0, %v507_v52 }
  0x23   : > { %279 = vperm.xlu0 %653, %v275_v8   ;;  %324 = vmatprep.subr.mxu0 %v270_v11  ;;  %v689_v11 = vmov 1966171168  }
  0x24   : > { %325 = vmatpush1.msra.mxu0 %v269_v12  ;;  %v528_v12 = vunpack.c.l.s4 %v689_v11 }
  0x25   : > { %613 = vmatmul.mubr.msk.f32.vlgmr.msra.gmra.mxu0 %vm287_vm0, %v273_v13  ;;  %384 = vperm.xlu1 %654, %v618_v18  }
  0x26   : > { %364 = vmatprep.mubr.f32.mxu0 %v687_v3  ;;  %v529_v13 = vunpack.c.0.s8 %v528_v12 }
  0x27   : > { %474 = vperm.xlu0 %653, %v470_v14  }
  0x29   : > { %614 = vmatmul.mubr.msk.f32.gmra.mxu0 %vm287_vm0, %v274_v15  ;;  %479 = vperm.xlu1 %654, %v471_v19   ;;  %v532_v15 = vsub.s32 %v529_v13, %v507_v52 }
  0x2b   : > { %503 = vperm.xlu0 %653, %v500_v16  }
  0x9a   : > { %v285_v21 = vpop.permute.xlu0 %284 }
  0x9c   : > { %v380_v32 = vpop.permute.xlu1 %379 }
  0x9e   : > { %v280_v26 = vpop.permute.xlu0 %279 }
  0xa0   : > { %v385_v33 = vpop.permute.xlu1 %384 }
  0xa2   : > { %v475_v38 = vpop.permute.xlu0 %474 }
  0xa4   : > { %v480_v41 = vpop.permute.xlu1 %479 }
  0xa6   : > { %v504_v60 = vpop.permute.xlu0 %503 }
  0xa7   : > { %v509_v63 = vrot.slane %v504_v60, %v508_v57 }
  0xe5   : > { %v360_v20 = vpop.f32.mrf.mxu0 }
  0xe6   : > { %v361_v29 = vadd.f32 %v360_v20, %v280_v26 }
  0xe7   : > { %v362_v22 = vpop.f32.mrf.mxu0 }
  0xe8   : > { %v363_v28 = vadd.f32 %v362_v22, %v280_v26 }
  0xe9   : > { %v366_v23 = vpop.f32.mrf.mxu0 }
  0xea   : > { %v367_v27 = vadd.f32 %v366_v23, %v285_v21 }
  0xeb   : > { %v368_v24 = vpop.f32.mrf.mxu0 }
  0xec   : > { %v369_v25 = vadd.f32 %v368_v24, %v285_v21 }
  0xee   : > { %421 = vmatprep.subr.mxu1 %v369_v25 }
  0xef   : > { %422 = vmatpush1.msra.mxu1 %v367_v27 }
  0xf0   : > { %423 = vmatprep.subr.mxu1 %v363_v28 }
  0xf1   : > { %424 = vmatpush1.msra.mxu1 %v361_v29 }
  0xf2   : > { %619 = vmatmul.mubr.msk.f32.vlgmr.msra.gmra.mxu1 %vm287_vm0, %v615_v30 }
  0xf3   : > { %463 = vmatprep.mubr.f32.mxu1 %v687_v3 }
  0xf6   : > { %620 = vmatmul.mubr.msk.f32.gmra.mxu1 %vm287_vm0, %v616_v31 }
 0x1b2   : > { %v459_v34 = vpop.f32.mrf.mxu1 }
 0x1b3   : > { %v460_v36 = vadd.f32 %v459_v34, %v380_v32 }
 0x1b4   : > { %v461_v35 = vpop.f32.mrf.mxu1 }
 0x1b5   : > { %v462_v39 = vadd.f32 %v461_v35, %v380_v32  ;;  %v482_v43 = vmul.f32 %v475_v38, %v460_v36 }
 0x1b6   : > { %v465_v37 = vpop.f32.mrf.mxu1 }
 0x1b7   : > { %v466_v40 = vadd.f32 %v465_v37, %v385_v33  ;;  %v483_v47 = vmul.f32 %v475_v38, %v462_v39 }
 0x1b8   : > { %v467_v42 = vpop.f32.mrf.mxu1 }
 0x1b9   : > { %v484_v44 = vmul.f32 %v480_v41, %v466_v40  ;;  %v468_v45 = vadd.f32 %v467_v42, %v385_v33 }
 0x1bb   : > { %v486_v48 = vadd.f32 %v484_v44, %v482_v43  ;;  %v485_v49 = vmul.f32 %v480_v41, %v468_v45 }
 0x1bd   : > { %v487_v50 = vrot.slane %v486_v48, 4  ;;  %v493_v51 = vadd.f32 %v485_v49, %v483_v47 }
 0x1bf   : > { %v488_v53 = vadd.f32 %v487_v50, %v486_v48  ;;  %v494_v54 = vrot.slane %v493_v51, 4 }
 0x1c1   : > { %v489_v55 = vrot.slane %v488_v53, 2  ;;  %v495_v56 = vadd.f32 %v494_v54, %v493_v51 }
 0x1c3   : > { %v490_v58 = vadd.f32 %v489_v55, %v488_v53  ;;  %v496_v59 = vrot.slane %v495_v56, 2 }
 0x1c5   : > { %v491_v61 = vrot.slane %v490_v58, 1  ;;  %v497_v62 = vadd.f32 %v496_v59, %v495_v56 }
 0x1c7   : > { %v492_v0 = vadd.f32 %v491_v61, %v490_v58  ;;  %v498_v1 = vrot.slane %v497_v62, 1 }
 0x1c9   : > { %v510_v2 = vadd.f32 %v509_v63, %v492_v0  ;;  %v499_v3 = vadd.f32 %v498_v1, %v497_v62 }
 0x1cb   : > { %v621_v4 = vmul.f32 -1.442695, %v510_v2  ;;  %v511_v5 = vadd.f32 %v509_v63, %v499_v3 }
 0x1cd   : > { %655 = vpow2.f32 %v621_v4  ;;  %v622_v6 = vmul.f32 -1.442695, %v511_v5 }
 0x1cf   : > { %657 = vpow2.f32 %v622_v6 }
 0x1da   : > { %v656_v7 = vpop.eup %655 }
 0x1db   : > { %v518_v8 = vadd.f32 1.0, %v656_v7 }
 0x1dc   : > { %v658_v9 = vpop.eup %657 }
 0x1dd   : > { %v519_v10 = vadd.f32 1.0, %v658_v9  ;;  %659 = vrcp.f32 %v518_v8 }
 0x1df   : > { %661 = vrcp.f32 %v519_v10 }
 0x1ea   : > { %v660_v14 = vpop.eup %659 }
 0x1ec   : > { %v662_v16 = vpop.eup %661 }
 0x1ed   : > { %v526_v17 = vcombine.low %v660_v14, %v662_v16 }
 0x1ef   : > { %v533_v18 = vrot.slane %v526_v17, %v532_v15 }
 0x1f1   : > { %v540_v19 = vrot.slane %v533_v18, %v532_v15 }
 0x1f3   : > { %546 = vst.msk [vmem:[%s265_s14] sm:$0x3] %vm544_vm1, %v540_v19 }
 0x1f4 PF: > { %p14_p9 = scmp.ge.s32.totalorder %s740_s23, 4   ;;  %s815_s20 = smov %s681_s21 }
 0x1f5   : > { %s816_s21 = smov %s749_s26  ;;  %s817_s22 = smov %s740_s23 }
 0x1f6   :  { %16 = sbr.rel (!%p14_p9) target bundleno = 5 (0x5), region = 115 }

</bundles_post_ra>
